<compile_context>
chip_gen: v7x
topology: tpu7x:2x2x1
jax: 0.10.0
libtpu: 0.0.40
codegen_flags: <defaults>
</compile_context>

<pallas_src>
import jax
import jax.numpy as jnp
from jax.experimental import pallas as pl
from jax.experimental.pallas import tpu as pltpu


def _hess_silu_kernel(x_ref, o_ref):
    x = x_ref[...].astype(jnp.float32)
    # sigmoid(x) == 0.5*tanh(0.5*x) + 0.5  -> single EUP op per element.
    s = 0.5 * jnp.tanh(0.5 * x) + 0.5
    t = s * (1.0 - s)
    o_ref[...] = (t * (2.0 + x * (1.0 - 2.0 * s))).astype(o_ref.dtype)


def _choose_lanes(n):
    """Widest lane-dense width (multiple of 128) that evenly tiles n."""
    for lanes in (2048, 1024, 512, 256, 128):
        if n >= lanes and n % lanes == 0:
            return lanes, 0
    # Fallback: lanes=128; pad only the (< 128-element) remainder.
    lanes = 128
    pad = (-n) % lanes
    return lanes, pad


_TARGET_BLOCK_BYTES = 2 << 20     # ~2 MiB blocks: near roofline knee, v5e-safe
_SINGLE_BLOCK_BYTES = 256 << 10   # below this, pipelining isn't worth a grid
_MIN_GRID_STEPS = 8               # aim for >= 8 steps on larger slabs


def _hess_silu_impl(x):
    orig_shape = x.shape
    dtype = x.dtype
    n = x.size
    if n == 0:
        return x

    lanes, pad = _choose_lanes(n)
    itemsize = jnp.dtype(dtype).itemsize

    x_flat = x.reshape(-1)
    if pad:
        x_flat = jnp.pad(x_flat, (0, pad))
    rows = (n + pad) // lanes
    x2d = x_flat.reshape(rows, lanes)

    slab_bytes = rows * lanes * itemsize
    row_bytes = lanes * itemsize

    if slab_bytes <= _SINGLE_BLOCK_BYTES:
        # Tiny slab: one block == full array dims (waives the (8,128) rule).
        block_rows = rows
    else:
        # VMEM cap (~2 MiB), rounded to a multiple of 32 rows so bf16/int8
        # sublane packing stays unmasked.
        max_block_rows = max(32, (_TARGET_BLOCK_BYTES // row_bytes) // 32 * 32)
        # Prefer enough grid steps for pipelining / megacore sharding.
        want_rows = -(-rows // _MIN_GRID_STEPS)
        want_rows = -(-want_rows // 32) * 32
        block_rows = max(32, min(max_block_rows, want_rows))
        if block_rows >= rows:
            block_rows = rows  # degenerate: whole slab in one block

    grid_n = pl.cdiv(rows, block_rows)  # partial last block masked by Pallas

    out2d = pl.pallas_call(
        _hess_silu_kernel,
        out_shape=jax.ShapeDtypeStruct((rows, lanes), dtype),
        grid=(grid_n,),
        in_specs=[pl.BlockSpec((block_rows, lanes), lambda i: (i, 0))],
        out_specs=pl.BlockSpec((block_rows, lanes), lambda i: (i, 0)),
        compiler_params=pltpu.CompilerParams(
            dimension_semantics=("parallel",)),
    )(x2d)

    out_flat = out2d.reshape(-1)
    if pad:
        out_flat = out_flat[:n]
    return out_flat.reshape(orig_shape)


# jit the whole wrapper so pad/reshape/slice bookkeeping fuses into one dispatch.
hess_silu = jax.jit(_hess_silu_impl)
# TODO(synk): add input_output_aliases={0: 0} when the caller donates x.


def hess_silu_ref(x):
    s = jax.nn.sigmoid(x)
    return (2 * s * (1 - s)
            + x * s * (1 - s) * (1 - s)
            - x * s * s * (1 - s))


if __name__ == "__main__":
    key = jax.random.PRNGKey(0)

    # Primary test: shape implied by the module usage.
    x = jax.random.normal(key, (2, 4, 16, 16), dtype=jnp.float32)
    out = jax.block_until_ready(hess_silu(x))
    ref = hess_silu_ref(x)
    assert out.shape == x.shape and out.dtype == x.dtype
    assert jnp.allclose(out, ref, atol=1e-5, rtol=1e-5), "mismatch vs reference"

    # Secondary test: awkward size exercising the lanes=128 fallback + pad path.
    x2 = jax.random.normal(jax.random.PRNGKey(1), (3, 5, 7, 11), dtype=jnp.float32)
    out2 = jax.block_until_ready(hess_silu(x2))
    ref2 = hess_silu_ref(x2)
    assert out2.shape == x2.shape
    assert jnp.allclose(out2, ref2, atol=1e-5, rtol=1e-5), "mismatch (pad path)"

    print("KERNEL_OK")
</pallas_src>

<mosaic_0001>
module attributes {stable_mosaic.version = 11 : i64} {
  func.func @_hess_silu_kernel(%arg0: i32, %arg1: memref<1x2048xf32, #tpu.memory_space<vmem>>, %arg2: memref<1x2048xf32, #tpu.memory_space<vmem>>) attributes {dimension_semantics = [#tpu.dimension_semantics<parallel>], iteration_bounds = array<i64: 1>, scalar_prefetch = 0 : i64, scratch_operands = 0 : i64, tpu.core_type = #tpu.core_type<tc>, window_params = [{transform_indices = @transform_0, window_bounds = array<i64: 1, 2048>}, {transform_indices = @transform_1, window_bounds = array<i64: 1, 2048>}]} {
    %c0 = arith.constant 0 : index
    %c0_0 = arith.constant 0 : index
    %0 = vector.load %arg1[%c0, %c0_0] : memref<1x2048xf32, #tpu.memory_space<vmem>>, vector<1x2048xf32>
    %cst = arith.constant 5.000000e-01 : f32
    %1 = vector.broadcast %cst : f32 to vector<1x2048xf32>
    %2 = arith.mulf %1, %0 : vector<1x2048xf32>
    %3 = math.tanh %2 : vector<1x2048xf32>
    %cst_1 = arith.constant 5.000000e-01 : f32
    %4 = vector.broadcast %cst_1 : f32 to vector<1x2048xf32>
    %5 = arith.mulf %4, %3 : vector<1x2048xf32>
    %cst_2 = arith.constant 5.000000e-01 : f32
    %6 = vector.broadcast %cst_2 : f32 to vector<1x2048xf32>
    %7 = arith.addf %5, %6 : vector<1x2048xf32>
    %cst_3 = arith.constant 1.000000e+00 : f32
    %8 = vector.broadcast %cst_3 : f32 to vector<1x2048xf32>
    %9 = arith.subf %8, %7 : vector<1x2048xf32>
    %10 = arith.mulf %7, %9 : vector<1x2048xf32>
    %cst_4 = arith.constant 2.000000e+00 : f32
    %11 = vector.broadcast %cst_4 : f32 to vector<1x2048xf32>
    %12 = arith.mulf %11, %7 : vector<1x2048xf32>
    %cst_5 = arith.constant 1.000000e+00 : f32
    %13 = vector.broadcast %cst_5 : f32 to vector<1x2048xf32>
    %14 = arith.subf %13, %12 : vector<1x2048xf32>
    %15 = arith.mulf %0, %14 : vector<1x2048xf32>
    %cst_6 = arith.constant 2.000000e+00 : f32
    %16 = vector.broadcast %cst_6 : f32 to vector<1x2048xf32>
    %17 = arith.addf %16, %15 : vector<1x2048xf32>
    %18 = arith.mulf %10, %17 : vector<1x2048xf32>
    %c0_7 = arith.constant 0 : index
    %c0_8 = arith.constant 0 : index
    %19 = vector.load %arg2[%c0_7, %c0_8] : memref<1x2048xf32, #tpu.memory_space<vmem>>, vector<1x2048xf32>
    tpu.vector_store %arg2[%c0_7, %c0_8], %18 {strides = array<i32>} : memref<1x2048xf32, #tpu.memory_space<vmem>>, vector<1x2048xf32>,
    return
  }
  func.func @transform_0(%arg0: i32) -> (i32, i32) {
    %c0_i32 = arith.constant 0 : i32
    %c0_i32_0 = arith.constant 0 : i32
    return %arg0, %c0_i32 : i32, i32
  }
  func.func @transform_1(%arg0: i32) -> (i32, i32) {
    %c0_i32 = arith.constant 0 : i32
    %c0_i32_0 = arith.constant 0 : i32
    return %arg0, %c0_i32 : i32, i32
  }
}

</mosaic_0001>

<bundles_post_ra>
// kernel: _hess_silu_impl.1
= control target key start
LH: loop header
LB: loop body
LE: loop exit
PB: predicated region body
PF: predicated region fallthrough
CT: control target
= control target key end

     0   :  { %s64_s0 = inlined_call_operand.vmem [shape: f32[1,2048], index: 0, kind: input, shape index: {}]   ;;  %s65_s1 = inlined_call_operand.vmem [shape: f32[1,2048], index: 1, kind: output, shape index: {}]  }
   0x1   :  { %v8_v0 = vld [vmem:[%s64_s0] sm:$0xff]  ;;  %v9_v1 = vld [vmem:[%s64_s0 + $0x8] sm:$0xff] }
   0x2   :  { %v10_v2 = vmul.f32 0.5, %v8_v0  ;;  %v11_v3 = vmul.f32 0.5, %v9_v1 }
   0x4   :  { %38 = vtanh.f32 %v10_v2 }
   0x5   :  { %40 = vtanh.f32 %v11_v3 }
   0xe   :  { %v39_v4 = vpop.eup %38 }
   0xf   :  { %v41_v5 = vpop.eup %40  ;;  %v14_v6 = vmul.f32 0.5, %v39_v4 }
  0x10   :  { %v15_v7 = vmul.f32 0.5, %v41_v5 }
  0x11   :  { %v16_v8 = vadd.f32 0.5, %v14_v6 }
  0x12   :  { %v17_v9 = vadd.f32 0.5, %v15_v7 }
  0x13   :  { %v18_v10 = vsub.f32 1.0, %v16_v8  ;;  %v22_v11 = vmul.f32 2.0, %v16_v8 }
  0x14   :  { %v19_v12 = vsub.f32 1.0, %v17_v9  ;;  %v23_v13 = vmul.f32 2.0, %v17_v9 }
  0x15   :  { %v24_v14 = vsub.f32 1.0, %v22_v11  ;;  %v20_v16 = vmul.f32 %v18_v10, %v16_v8 }
  0x16   :  { %v25_v15 = vsub.f32 1.0, %v23_v13  ;;  %v21_v18 = vmul.f32 %v19_v12, %v17_v9 }
  0x17   :  { %v26_v17 = vmul.f32 %v24_v14, %v8_v0 }
  0x18   :  { %v27_v19 = vmul.f32 %v25_v15, %v9_v1 }
  0x19   :  { %v28_v20 = vadd.f32 2.0, %v26_v17 }
  0x1a   :  { %v29_v21 = vadd.f32 2.0, %v27_v19 }
  0x1b   :  { %v30_v22 = vmul.f32 %v28_v20, %v20_v16 }
  0x1c   :  { %v31_v23 = vmul.f32 %v29_v21, %v21_v18 }
  0x1d   :  { %32 = vst [vmem:[%s65_s1] sm:$0xff] %v30_v22 }
  0x1e   :  { %33 = vst [vmem:[%s65_s1 + $0x8] sm:$0xff] %v31_v23 }

</bundles_post_ra>
